<compile_context>
chip_gen: v7x
topology: tpu7x:2x2x1
jax: 0.10.0
libtpu: 0.0.40
codegen_flags: <defaults>
</compile_context>

<pallas_src>
import jax
import jax.numpy as jnp
from jax.experimental import pallas as pl
from jax.experimental.pallas import tpu as pltpu


_K = 784          # 28*28 input features
_K_PAD = 896      # 7*128, MXU-aligned contraction dim for layer 1
_OUT = 10
_OUT_PAD = 128    # lane-dense output width
_NEG = -1e30      # pad-logit bias: exp(pad) == 0 and max() ignores pads


def _mlp_kernel(x_ref, w1_ref, b1_ref, w2_ref, b2_ref, w3_ref, b3_ref, o_ref):
    # x: [TB, 896] bf16; weights bf16; biases f32; accumulation f32.
    x = x_ref[...]

    # layer 1: x @ w1 + b1 ; relu   (drop1 p=0.2: identity in eval mode)
    z1 = jnp.dot(x, w1_ref[...], preferred_element_type=jnp.float32)
    a1 = jnp.maximum(z1 + b1_ref[...], 0.0)

    # layer 2: a1 @ w2 + b2 ; relu  (drop2 p=0.5: identity in eval mode)
    z2 = jnp.dot(a1.astype(jnp.bfloat16), w2_ref[...],
                 preferred_element_type=jnp.float32)
    a2 = jnp.maximum(z2 + b2_ref[...], 0.0)

    # layer 3: a2 @ w3 + b3  (w3/b3 padded to 128 lanes; pad lanes ~ -1e30)
    z3 = jnp.dot(a2.astype(jnp.bfloat16), w3_ref[...],
                 preferred_element_type=jnp.float32)
    z3 = z3 + b3_ref[...]

    # numerically stable log_softmax over the last dim; pad lanes contribute 0
    m = jnp.max(z3, axis=-1, keepdims=True)
    shifted = z3 - m
    lse = jnp.log(jnp.sum(jnp.exp(shifted), axis=-1, keepdims=True))
    o_ref[...] = shifted - lse


def _round_up(n, m):
    return (n + m - 1) // m * m


@jax.jit
def network_with_sub3_forward(x, w1, b1, w2, b2, w3, b3):
    """x: [B, C, H, W] (or already [B, 784]); returns log-probs [B, 10]."""
    B = x.shape[0]
    H = w1.shape[1]

    x2 = x.reshape(B, -1)
    assert x2.shape[1] == _K, "expected 784 flattened input features"

    # Batch tile: >= full batch (rounded to 16 for bf16 sublane packing),
    # capped at 512 rows per tile so big batches stream through the pipeline.
    TB = 512 if B >= 512 else _round_up(max(B, 1), 16)
    B_pad = _round_up(B, TB)

    # bf16 activations / weights (f32 accumulation in-kernel); K padded to 896.
    xp = jnp.zeros((B_pad, _K_PAD), jnp.bfloat16)
    xp = xp.at[:B, :_K].set(x2.astype(jnp.bfloat16))

    w1p = jnp.zeros((_K_PAD, H), jnp.bfloat16).at[:_K, :].set(w1.astype(jnp.bfloat16))
    w2b = w2.astype(jnp.bfloat16)
    w3p = jnp.zeros((H, _OUT_PAD), jnp.bfloat16).at[:, :_OUT].set(w3.astype(jnp.bfloat16))

    b1r = b1.reshape(1, H).astype(jnp.float32)
    b2r = b2.reshape(1, H).astype(jnp.float32)
    b3p = jnp.full((1, _OUT_PAD), _NEG, jnp.float32).at[0, :_OUT].set(
        b3.astype(jnp.float32))

    grid = (B_pad // TB,)

    flops = 2 * B_pad * (_K_PAD * H + H * H + H * _OUT_PAD)
    bytes_accessed = (
        xp.size * 2
        + (w1p.size + w2b.size + w3p.size) * 2
        + (b1r.size + b2r.size + b3p.size) * 4
        + B_pad * _OUT_PAD * 4
    )
    cost = pl.CostEstimate(
        flops=flops,
        transcendentals=B_pad * (_OUT_PAD + 1),
        bytes_accessed=bytes_accessed,
    )

    out = pl.pallas_call(
        _mlp_kernel,
        out_shape=jax.ShapeDtypeStruct((B_pad, _OUT_PAD), jnp.float32),
        grid=grid,
        in_specs=[
            pl.BlockSpec((TB, _K_PAD), lambda i: (i, 0)),   # x: streamed per tile
            pl.BlockSpec((_K_PAD, H), lambda i: (0, 0)),    # w1: VMEM-resident
            pl.BlockSpec((1, H), lambda i: (0, 0)),         # b1
            pl.BlockSpec((H, H), lambda i: (0, 0)),         # w2
            pl.BlockSpec((1, H), lambda i: (0, 0)),         # b2
            pl.BlockSpec((H, _OUT_PAD), lambda i: (0, 0)),  # w3 (lane-padded)
            pl.BlockSpec((1, _OUT_PAD), lambda i: (0, 0)),  # b3 (lane-padded)
        ],
        out_specs=pl.BlockSpec((TB, _OUT_PAD), lambda i: (i, 0)),
        compiler_params=pltpu.CompilerParams(
            dimension_semantics=("parallel",),
            vmem_limit_bytes=32 * 1024 * 1024,
        ),
        cost_estimate=cost,
    )(xp, w1p, b1r, w2b, b2r, w3p, b3p)

    return out[:B, :_OUT]


def init_params(neuron, key):
    """Deterministic init matching nn.init.xavier_uniform_ / constant_(0.01)."""
    k1, k2, k3 = jax.random.split(key, 3)

    def xavier(k, fan_in, fan_out):
        bound = (6.0 / (fan_in + fan_out)) ** 0.5
        return jax.random.uniform(
            k, (fan_in, fan_out), jnp.float32, minval=-bound, maxval=bound
        )

    w1 = xavier(k1, 784, neuron)
    w2 = xavier(k2, neuron, neuron)
    w3 = xavier(k3, neuron, 10)
    b1 = jnp.full((neuron,), 0.01, jnp.float32)
    b2 = jnp.full((neuron,), 0.01, jnp.float32)
    b3 = jnp.full((10,), 0.01, jnp.float32)
    return w1, b1, w2, b2, w3, b3


if __name__ == "__main__":
    key = jax.random.PRNGKey(0)
    kx, kp = jax.random.split(key)

    neuron = 128
    batch = 2
    # MNIST-like input: [B, 1, 28, 28] -> flattened to 784 features.
    x = jax.random.normal(kx, (batch, 1, 28, 28), jnp.float32)

    w1, b1, w2, b2, w3, b3 = init_params(neuron, kp)

    y = network_with_sub3_forward(x, w1, b1, w2, b2, w3, b3)
    y = jax.block_until_ready(y)

    # Reference check in plain JAX f32 (eval-mode dropout == identity).
    # Tolerance loosened for the bf16 matmul path (f32 accumulation).
    xf = x.reshape(batch, -1)
    z1 = jnp.maximum(xf @ w1 + b1, 0.0)
    z2 = jnp.maximum(z1 @ w2 + b2, 0.0)
    z3 = z2 @ w3 + b3
    ref = jax.nn.log_softmax(z3, axis=-1)

    assert y.shape == (batch, 10)
    assert bool(jnp.all(jnp.isfinite(y)))
    assert jnp.allclose(y, ref, atol=5e-2, rtol=5e-2), (
        f"max abs err {float(jnp.max(jnp.abs(y - ref)))}"
    )

    print("KERNEL_OK")
</pallas_src>

<mosaic_0001>
module attributes {stable_mosaic.version = 11 : i64} {
  func.func @_mlp_kernel(%arg0: i32, %arg1: memref<16x896xbf16, #tpu.memory_space<vmem>>, %arg2: memref<896x128xbf16, #tpu.memory_space<vmem>>, %arg3: memref<1x128xf32, #tpu.memory_space<vmem>>, %arg4: memref<128x128xbf16, #tpu.memory_space<vmem>>, %arg5: memref<1x128xf32, #tpu.memory_space<vmem>>, %arg6: memref<128x128xbf16, #tpu.memory_space<vmem>>, %arg7: memref<1x128xf32, #tpu.memory_space<vmem>>, %arg8: memref<16x128xf32, #tpu.memory_space<vmem>>) attributes {dimension_semantics = [#tpu.dimension_semantics<parallel>], iteration_bounds = array<i64: 1>, scalar_prefetch = 0 : i64, scratch_operands = 0 : i64, tpu.core_type = #tpu.core_type<tc>, window_params = [{transform_indices = @transform_0, window_bounds = array<i64: 16, 896>}, {pipeline_mode = #tpu.pipeline_mode<synchronous>, transform_indices = @transform_1, window_bounds = array<i64: 896, 128>}, {pipeline_mode = #tpu.pipeline_mode<synchronous>, transform_indices = @transform_2, window_bounds = array<i64: 1, 128>}, {pipeline_mode = #tpu.pipeline_mode<synchronous>, transform_indices = @transform_3, window_bounds = array<i64: 128, 128>}, {pipeline_mode = #tpu.pipeline_mode<synchronous>, transform_indices = @transform_4, window_bounds = array<i64: 1, 128>}, {pipeline_mode = #tpu.pipeline_mode<synchronous>, transform_indices = @transform_5, window_bounds = array<i64: 128, 128>}, {pipeline_mode = #tpu.pipeline_mode<synchronous>, transform_indices = @transform_6, window_bounds = array<i64: 1, 128>}, {transform_indices = @transform_7, window_bounds = array<i64: 16, 128>}]} {
    %c0 = arith.constant 0 : index
    %c0_0 = arith.constant 0 : index
    %0 = vector.load %arg1[%c0, %c0_0] : memref<16x896xbf16, #tpu.memory_space<vmem>>, vector<16x896xbf16>
    %c0_1 = arith.constant 0 : index
    %c0_2 = arith.constant 0 : index
    %1 = vector.load %arg2[%c0_1, %c0_2] : memref<896x128xbf16, #tpu.memory_space<vmem>>, vector<896x128xbf16>
    %cst = arith.constant dense<0.000000e+00> : vector<16x128xf32>
    %2 = tpu.matmul %0, %1, %cst {dimension_numbers = #tpu.dot_dimension_numbers<[1], [0], [0], [1], [0, 0, 1, 1], [], []>} : vector<16x896xbf16>, vector<896x128xbf16>, vector<16x128xf32> -> vector<16x128xf32>
    %c0_3 = arith.constant 0 : index
    %c0_4 = arith.constant 0 : index
    %3 = vector.load %arg3[%c0_3, %c0_4] : memref<1x128xf32, #tpu.memory_space<vmem>>, vector<1x128xf32>
    %4 = vector.broadcast %3 : vector<1x128xf32> to vector<16x128xf32>
    %5 = arith.addf %2, %4 : vector<16x128xf32>
    %cst_5 = arith.constant 0.000000e+00 : f32
    %6 = vector.broadcast %cst_5 : f32 to vector<16x128xf32>
    %7 = arith.maximumf %5, %6 : vector<16x128xf32>
    %8 = arith.truncf %7 : vector<16x128xf32> to vector<16x128xbf16>
    %c0_6 = arith.constant 0 : index
    %c0_7 = arith.constant 0 : index
    %9 = vector.load %arg4[%c0_6, %c0_7] : memref<128x128xbf16, #tpu.memory_space<vmem>>, vector<128x128xbf16>
    %cst_8 = arith.constant dense<0.000000e+00> : vector<16x128xf32>
    %10 = tpu.matmul %8, %9, %cst_8 {dimension_numbers = #tpu.dot_dimension_numbers<[1], [0], [0], [1], [0, 0, 1, 1], [], []>} : vector<16x128xbf16>, vector<128x128xbf16>, vector<16x128xf32> -> vector<16x128xf32>
    %c0_9 = arith.constant 0 : index
    %c0_10 = arith.constant 0 : index
    %11 = vector.load %arg5[%c0_9, %c0_10] : memref<1x128xf32, #tpu.memory_space<vmem>>, vector<1x128xf32>
    %12 = vector.broadcast %11 : vector<1x128xf32> to vector<16x128xf32>
    %13 = arith.addf %10, %12 : vector<16x128xf32>
    %cst_11 = arith.constant 0.000000e+00 : f32
    %14 = vector.broadcast %cst_11 : f32 to vector<16x128xf32>
    %15 = arith.maximumf %13, %14 : vector<16x128xf32>
    %16 = arith.truncf %15 : vector<16x128xf32> to vector<16x128xbf16>
    %c0_12 = arith.constant 0 : index
    %c0_13 = arith.constant 0 : index
    %17 = vector.load %arg6[%c0_12, %c0_13] : memref<128x128xbf16, #tpu.memory_space<vmem>>, vector<128x128xbf16>
    %cst_14 = arith.constant dense<0.000000e+00> : vector<16x128xf32>
    %18 = tpu.matmul %16, %17, %cst_14 {dimension_numbers = #tpu.dot_dimension_numbers<[1], [0], [0], [1], [0, 0, 1, 1], [], []>} : vector<16x128xbf16>, vector<128x128xbf16>, vector<16x128xf32> -> vector<16x128xf32>
    %c0_15 = arith.constant 0 : index
    %c0_16 = arith.constant 0 : index
    %19 = vector.load %arg7[%c0_15, %c0_16] : memref<1x128xf32, #tpu.memory_space<vmem>>, vector<1x128xf32>
    %20 = vector.broadcast %19 : vector<1x128xf32> to vector<16x128xf32>
    %21 = arith.addf %18, %20 : vector<16x128xf32>
    %cst_17 = arith.constant dense<0xFF800000> : vector<16xf32>
    %22 = vector.multi_reduction <maximumf>, %21, %cst_17 [1] : vector<16x128xf32> to vector<16xf32>
    %23 = vector.shape_cast %22 : vector<16xf32> to vector<16x1xf32>
    %24 = vector.broadcast %23 : vector<16x1xf32> to vector<16x128xf32>
    %25 = arith.subf %21, %24 : vector<16x128xf32>
    %26 = math.exp %25 : vector<16x128xf32>
    %cst_18 = arith.constant dense<0.000000e+00> : vector<16xf32>
    %27 = vector.multi_reduction <add>, %26, %cst_18 [1] : vector<16x128xf32> to vector<16xf32>
    %28 = vector.shape_cast %27 : vector<16xf32> to vector<16x1xf32>
    %29 = math.log %28 : vector<16x1xf32>
    %30 = vector.broadcast %29 : vector<16x1xf32> to vector<16x128xf32>
    %31 = arith.subf %25, %30 : vector<16x128xf32>
    %c0_19 = arith.constant 0 : index
    %c0_20 = arith.constant 0 : index
    %32 = vector.load %arg8[%c0_19, %c0_20] : memref<16x128xf32, #tpu.memory_space<vmem>>, vector<16x128xf32>
    tpu.vector_store %arg8[%c0_19, %c0_20], %31 {strides = array<i32>} : memref<16x128xf32, #tpu.memory_space<vmem>>, vector<16x128xf32>,
    return
  }
  func.func @transform_0(%arg0: i32) -> (i32, i32) {
    %c0_i32 = arith.constant 0 : i32
    %c0_i32_0 = arith.constant 0 : i32
    return %arg0, %c0_i32 : i32, i32
  }
  func.func @transform_1(%arg0: i32) -> (i32, i32) {
    %c0_i32 = arith.constant 0 : i32
    %c0_i32_0 = arith.constant 0 : i32
    %c0_i32_1 = arith.constant 0 : i32
    return %c0_i32, %c0_i32_0 : i32, i32
  }
  func.func @transform_2(%arg0: i32) -> (i32, i32) {
    %c0_i32 = arith.constant 0 : i32
    %c0_i32_0 = arith.constant 0 : i32
    %c0_i32_1 = arith.constant 0 : i32
    return %c0_i32, %c0_i32_0 : i32, i32
  }
  func.func @transform_3(%arg0: i32) -> (i32, i32) {
    %c0_i32 = arith.constant 0 : i32
    %c0_i32_0 = arith.constant 0 : i32
    %c0_i32_1 = arith.constant 0 : i32
    return %c0_i32, %c0_i32_0 : i32, i32
  }
  func.func @transform_4(%arg0: i32) -> (i32, i32) {
    %c0_i32 = arith.constant 0 : i32
    %c0_i32_0 = arith.constant 0 : i32
    %c0_i32_1 = arith.constant 0 : i32
    return %c0_i32, %c0_i32_0 : i32, i32
  }
  func.func @transform_5(%arg0: i32) -> (i32, i32) {
    %c0_i32 = arith.constant 0 : i32
    %c0_i32_0 = arith.constant 0 : i32
    %c0_i32_1 = arith.constant 0 : i32
    return %c0_i32, %c0_i32_0 : i32, i32
  }
  func.func @transform_6(%arg0: i32) -> (i32, i32) {
    %c0_i32 = arith.constant 0 : i32
    %c0_i32_0 = arith.constant 0 : i32
    %c0_i32_1 = arith.constant 0 : i32
    return %c0_i32, %c0_i32_0 : i32, i32
  }
  func.func @transform_7(%arg0: i32) -> (i32, i32) {
    %c0_i32 = arith.constant 0 : i32
    %c0_i32_0 = arith.constant 0 : i32
    return %arg0, %c0_i32 : i32, i32
  }
}

</mosaic_0001>

<bundles_post_ra>
// kernel: network_with_sub3_forward.1
= control target key start
LH: loop header
LB: loop body
LE: loop exit
PB: predicated region body
PF: predicated region fallthrough
CT: control target
= control target key end

     0   :  { %v1273_v38 = vmov 0.0   ;;  %vm1274_vm0 = vmmov 0   ;;  %s1597_s1 = inlined_call_operand.vmem [shape: bf16[896,128], index: 1, kind: input, shape index: {}]   ;;  %s1598_s0 = inlined_call_operand.vmem [shape: bf16[16,896], index: 0, kind: input, shape index: {}]   ;;  %s1599_s3 = inlined_call_operand.vmem [shape: bf16[128,128], index: 3, kind: input, shape index: {}]   ;;  %s1600_s5 = inlined_call_operand.vmem [shape: bf16[128,128], index: 5, kind: input, shape index: {}]   ;;  %s1601_s2 = inlined_call_operand.vmem [shape: f32[1,128], index: 2, kind: input, shape index: {}]   ;;  %s1602_s4 = inlined_call_operand.vmem [shape: f32[1,128], index: 4, kind: input, shape index: {}]   ;;  %s1603_s6 = inlined_call_operand.vmem [shape: f32[1,128], index: 6, kind: input, shape index: {}]   ;;  %s1604_s7 = inlined_call_operand.vmem [shape: f32[16,128], index: 7, kind: output, shape index: {}]  }
   0x1   :  { %v1183_v0 = vld [vmem:[%s1597_s1 + $0x40] sm:$0xff]   ;;  %v1187_v4 = vld [vmem:[%s1597_s1 + $0x48] sm:$0xff]   ;;  %v1191_v8 = vld [vmem:[%s1597_s1 + $0x50] sm:$0xff]  }
   0x2   :  { %v1184_v1 = vld [vmem:[%s1597_s1] sm:$0xff]   ;;  %1028 = vmatprep.subr.bf16.mxu0 %v1183_v0  ;;  %v1188_v5 = vld [vmem:[%s1597_s1 + $0x8] sm:$0xff]   ;;  %v1192_v9 = vld [vmem:[%s1597_s1 + $0x10] sm:$0xff]  }
   0x3   :  { %v1185_v2 = vld [vmem:[%s1597_s1 + $0xc0] sm:$0xff]   ;;  %1029 = vmatpush3.bf16.msra.mxu0 %v1184_v1  ;;  %v1189_v6 = vld [vmem:[%s1597_s1 + $0xc8] sm:$0xff]   ;;  %v1193_v10 = vld [vmem:[%s1597_s1 + $0xd0] sm:$0xff]  }
   0x4   :  { %v1186_v3 = vld [vmem:[%s1597_s1 + $0x80] sm:$0xff]   ;;  %1050 = vmatprep.subr.bf16.mxu1 %v1185_v2  ;;  %1030 = vmatprep.subr.bf16.mxu0 %v1187_v4  ;;  %v1190_v7 = vld [vmem:[%s1597_s1 + $0x88] sm:$0xff]   ;;  %v1194_v11 = vld [vmem:[%s1597_s1 + $0x90] sm:$0xff]  }
   0x5   :  { %1051 = vmatpush3.bf16.msra.mxu1 %v1186_v3  ;;  %v1195_v12 = vld [vmem:[%s1597_s1 + $0x58] sm:$0xff]   ;;  %v1199_v16 = vld [vmem:[%s1597_s1 + $0x60] sm:$0xff]   ;;  %v1203_v20 = vld [vmem:[%s1597_s1 + $0x68] sm:$0xff]  }
   0x6   :  { %1052 = vmatprep.subr.bf16.mxu1 %v1189_v6  ;;  %v1196_v13 = vld [vmem:[%s1597_s1 + $0x18] sm:$0xff]   ;;  %v1200_v17 = vld [vmem:[%s1597_s1 + $0x20] sm:$0xff]   ;;  %v1204_v21 = vld [vmem:[%s1597_s1 + $0x28] sm:$0xff]  }
   0x7   :  { %1031 = vmatpush3.bf16.msra.mxu0 %v1188_v5  ;;  %v1197_v14 = vld [vmem:[%s1597_s1 + $0xd8] sm:$0xff]   ;;  %v1201_v18 = vld [vmem:[%s1597_s1 + $0xe0] sm:$0xff]   ;;  %v1205_v22 = vld [vmem:[%s1597_s1 + $0xe8] sm:$0xff]  }
   0x8   :  { %1032 = vmatprep.subr.bf16.mxu0 %v1191_v8  ;;  %v1198_v15 = vld [vmem:[%s1597_s1 + $0x98] sm:$0xff]   ;;  %v1202_v19 = vld [vmem:[%s1597_s1 + $0xa0] sm:$0xff]   ;;  %v1206_v23 = vld [vmem:[%s1597_s1 + $0xa8] sm:$0xff]  }
   0x9   :  { %1053 = vmatpush3.bf16.msra.mxu1 %v1190_v7  ;;  %v1207_v24 = vld [vmem:[%s1597_s1 + $0x70] sm:$0xff]   ;;  %v1211_v28 = vld [vmem:[%s1597_s1 + $0x78] sm:$0xff]   ;;  %v1216_v32 = vld [vmem:[%s1598_s0 + $0x4] ss:$28 sps:$4 sm:$0xff]  }
   0xa   :  { %1054 = vmatprep.subr.bf16.mxu1 %v1193_v10  ;;  %v1208_v25 = vld [vmem:[%s1597_s1 + $0x30] sm:$0xff]   ;;  %v1212_v29 = vld [vmem:[%s1597_s1 + $0x38] sm:$0xff]   ;;  %558 = vmatprep.mubr.bf16.mxu0 %v1216_v32  ;;  %v1218_v34 = vld [vmem:[%s1597_s1 + $0x140] sm:$0xff]  }
   0xb   :  { %1033 = vmatpush3.bf16.msra.mxu0 %v1192_v9  ;;  %v1209_v26 = vld [vmem:[%s1597_s1 + $0xf0] sm:$0xff]   ;;  %v1213_v30 = vld [vmem:[%s1597_s1 + $0xf8] sm:$0xff]   ;;  %v1219_v35 = vld [vmem:[%s1598_s0 + $0x8] ss:$28 sps:$4 sm:$0xff]  }
   0xc   :  { %1034 = vmatprep.subr.bf16.mxu0 %v1195_v12  ;;  %v1210_v27 = vld [vmem:[%s1597_s1 + $0xb0] sm:$0xff]   ;;  %v1214_v31 = vld [vmem:[%s1598_s0] ss:$28 sps:$4 sm:$0xff]   ;;  %v1221_v36 = vld [vmem:[%s1598_s0 + $0xc] ss:$28 sps:$4 sm:$0xff]  }
   0xd   :  { %1055 = vmatpush3.bf16.msra.mxu1 %v1194_v11  ;;  %v1217_v33 = vld [vmem:[%s1597_s1 + $0xb8] sm:$0xff]   ;;  %v1222_v37 = vld [vmem:[%s1597_s1 + $0x100] sm:$0xff]   ;;  %599 = vmatprep.mubr.bf16.mxu1 %v1221_v36  ;;  %v1224_v40 = vld [vmem:[%s1597_s1 + $0x148] sm:$0xff]  }
   0xe   :  { %1056 = vmatprep.subr.bf16.mxu1 %v1197_v14  ;;  %v1223_v39 = vld [vmem:[%s1597_s1 + $0x180] sm:$0xff]   ;;  %v1225_v41 = vld [vmem:[%s1597_s1 + $0x108] sm:$0xff]   ;;  %v1227_v43 = vld [vmem:[%s1597_s1 + $0x150] sm:$0xff]  }
   0xf   :  { %1035 = vmatpush3.bf16.msra.mxu0 %v1196_v13  ;;  %v1226_v42 = vld [vmem:[%s1597_s1 + $0x188] sm:$0xff]   ;;  %v1228_v44 = vld [vmem:[%s1597_s1 + $0x110] sm:$0xff]   ;;  %v1230_v46 = vld [vmem:[%s1597_s1 + $0x158] sm:$0xff]  }
  0x10   :  { %1036 = vmatprep.subr.bf16.mxu0 %v1199_v16  ;;  %v1229_v45 = vld [vmem:[%s1597_s1 + $0x190] sm:$0xff]   ;;  %v1231_v47 = vld [vmem:[%s1597_s1 + $0x118] sm:$0xff]   ;;  %v1233_v49 = vld [vmem:[%s1597_s1 + $0x160] sm:$0xff]  }
  0x11   :  { %1057 = vmatpush3.bf16.msra.mxu1 %v1198_v15  ;;  %v1232_v48 = vld [vmem:[%s1597_s1 + $0x198] sm:$0xff]   ;;  %v1234_v50 = vld [vmem:[%s1597_s1 + $0x120] sm:$0xff]   ;;  %v1236_v52 = vld [vmem:[%s1597_s1 + $0x168] sm:$0xff]  }
  0x12   :  { %1058 = vmatprep.subr.bf16.mxu1 %v1201_v18  ;;  %v1235_v51 = vld [vmem:[%s1597_s1 + $0x1a0] sm:$0xff]   ;;  %v1237_v53 = vld [vmem:[%s1597_s1 + $0x128] sm:$0xff]   ;;  %v1239_v55 = vld [vmem:[%s1597_s1 + $0x170] sm:$0xff]  }
  0x13   :  { %1037 = vmatpush3.bf16.msra.mxu0 %v1200_v17  ;;  %v1238_v54 = vld [vmem:[%s1597_s1 + $0x1a8] sm:$0xff]   ;;  %v1240_v56 = vld [vmem:[%s1597_s1 + $0x130] sm:$0xff]   ;;  %v1242_v59 = vld [vmem:[%s1597_s1 + $0x178] sm:$0xff]  }
  0x14   :  { %1038 = vmatprep.subr.bf16.mxu0 %v1203_v20  ;;  %v1241_v57 = vld [vmem:[%s1597_s1 + $0x1b0] sm:$0xff]   ;;  %v1243_v60 = vld [vmem:[%s1597_s1 + $0x138] sm:$0xff]   ;;  %v1249_v0 = vld [vmem:[%s1599_s3] sm:$0xff]  }
  0x15   :  { %1059 = vmatpush3.bf16.msra.mxu1 %v1202_v19  ;;  %v1246_v58 = vld [vmem:[%s1598_s0 + $0x14] ss:$28 sps:$4 sm:$0xff]   ;;  %v1247_v61 = vld [vmem:[%s1597_s1 + $0x1b8] sm:$0xff]   ;;  %v1250_v1 = vld [vmem:[%s1599_s3 + $0x8] sm:$0xff]  }
  0x16   :  { %1060 = vmatprep.subr.bf16.mxu1 %v1205_v22  ;;  %v1244_v62 = vld [vmem:[%s1598_s0 + $0x10] ss:$28 sps:$4 sm:$0xff]   ;;  %v1248_v63 = vld [vmem:[%s1598_s0 + $0x18] ss:$28 sps:$4 sm:$0xff]   ;;  %v1253_v4 = vld [vmem:[%s1599_s3 + $0x20] sm:$0xff]  }
  0x17   :  { %1039 = vmatpush3.bf16.msra.mxu0 %v1204_v21  ;;  %v1251_v2 = vld [vmem:[%s1599_s3 + $0x10] sm:$0xff]   ;;  %v1252_v3 = vld [vmem:[%s1599_s3 + $0x18] sm:$0xff]   ;;  %v1254_v5 = vld [vmem:[%s1599_s3 + $0x28] sm:$0xff]  }
  0x18   :  { %1040 = vmatprep.subr.bf16.mxu0 %v1207_v24  ;;  %v1255_v6 = vld [vmem:[%s1599_s3 + $0x30] sm:$0xff]   ;;  %v1256_v7 = vld [vmem:[%s1599_s3 + $0x38] sm:$0xff]   ;;  %v1257_v8 = vld [vmem:[%s1600_s5] sm:$0xff]  }
  0x19   :  { %1061 = vmatpush3.bf16.msra.mxu1 %v1206_v23  ;;  %v1258_v9 = vld [vmem:[%s1600_s5 + $0x8] sm:$0xff]   ;;  %v1259_v10 = vld [vmem:[%s1600_s5 + $0x10] sm:$0xff]   ;;  %v1260_v11 = vld [vmem:[%s1600_s5 + $0x18] sm:$0xff]  }
  0x1a   :  { %1062 = vmatprep.subr.bf16.mxu1 %v1209_v26  ;;  %v1261_v12 = vld [vmem:[%s1600_s5 + $0x20] sm:$0xff]   ;;  %v1262_v13 = vld [vmem:[%s1600_s5 + $0x28] sm:$0xff]  }
  0x1b   :  { %1041 = vmatpush3.bf16.msra.mxu0 %v1208_v25  ;;  %v946_v15 = vld [vmem:[%s1601_s2] ss:$0 sm:$0xff] }
  0x1c   :  { %1042 = vmatprep.subr.bf16.mxu0 %v1211_v28 }
  0x1d   :  { %1063 = vmatpush3.bf16.msra.mxu1 %v1210_v27 }
  0x1e   :  { %1064 = vmatprep.subr.bf16.mxu1 %v1213_v30 }
  0x1f   :  { %1043 = vmatpush3.bf16.msra.mxu0 %v1212_v29 }
  0x20   :  { %1072 = vmatprep.subr.bf16.mxu0 %v1218_v34 }
  0x21   :  { %1065 = vmatpush3.bf16.msra.mxu1 %v1217_v33 }
  0x22   :  { %559 = vmatmul.mubr.bf16.vlgmr.msra.gmra.mrb[0].mxu0 %v1214_v31  ;;  %1121 = vmatprep.subr.bf16.mxu1 %v1273_v38 }
  0x23   :  { %1073 = vmatpush3.bf16.msra.mxu0 %v1222_v37  ;;  %640 = vmatprep.mubr.bf16.mxu0 %v1246_v58 }
  0x24   :  { %600 = vmatmul.mubr.bf16.vlgmr.msra.gmra.mrb[0].mxu1 %v1219_v35  ;;  %1074 = vmatprep.subr.bf16.mxu0 %v1224_v40 }
  0x25   :  { %1122 = vmatpush3.bf16.msra.mxu1 %v1223_v39  ;;  %1137 = vmatprep.mubr.msk.bf16.mxu1 %vm1274_vm0, %v1273_v38 }
  0x26   :  { %1123 = vmatprep.subr.bf16.mxu1 %v1273_v38 }
  0x27   :  { %1075 = vmatpush3.bf16.msra.mxu0 %v1225_v41 }
  0x28   :  { %1076 = vmatprep.subr.bf16.mxu0 %v1227_v43 }
  0x29   :  { %1124 = vmatpush3.bf16.msra.mxu1 %v1226_v42 }
  0x2a   :  { %1125 = vmatprep.subr.bf16.mxu1 %v1273_v38 }
  0x2b   :  { %1077 = vmatpush3.bf16.msra.mxu0 %v1228_v44 }
  0x2c   :  { %1078 = vmatprep.subr.bf16.mxu0 %v1230_v46 }
  0x2d   :  { %1126 = vmatpush3.bf16.msra.mxu1 %v1229_v45 }
  0x2e   :  { %1127 = vmatprep.subr.bf16.mxu1 %v1273_v38 }
  0x2f   :  { %1079 = vmatpush3.bf16.msra.mxu0 %v1231_v47 }
  0x30   :  { %1080 = vmatprep.subr.bf16.mxu0 %v1233_v49  ;;  %v1263_v49 = vld [vmem:[%s1600_s5 + $0x30] sm:$0xff]  }
  0x31   :  { %1128 = vmatpush3.bf16.msra.mxu1 %v1232_v48 }
  0x32   :  { %1129 = vmatprep.subr.bf16.mxu1 %v1273_v38 }
  0x33   :  { %1081 = vmatpush3.bf16.msra.mxu0 %v1234_v50  ;;  %v1264_v50 = vld [vmem:[%s1600_s5 + $0x38] sm:$0xff]  }
  0x34   :  { %1082 = vmatprep.subr.bf16.mxu0 %v1236_v52 }
  0x35   :  { %1130 = vmatpush3.bf16.msra.mxu1 %v1235_v51  ;;  %v1010_v51 = vld [vmem:[%s1602_s4] ss:$0 sm:$0xff] }
  0x36   :  { %1131 = vmatprep.subr.bf16.mxu1 %v1273_v38 }
  0x37   :  { %1083 = vmatpush3.bf16.msra.mxu0 %v1237_v53 }
  0x38   :  { %1084 = vmatprep.subr.bf16.mxu0 %v1239_v55 }
  0x39   :  { %1132 = vmatpush3.bf16.msra.mxu1 %v1238_v54 }
  0x3a   :  { %1133 = vmatprep.subr.bf16.mxu1 %v1273_v38 }
  0x3b   :  { %1085 = vmatpush3.bf16.msra.mxu0 %v1240_v56 }
  0x3c   :  { %1086 = vmatprep.subr.bf16.mxu0 %v1242_v59 }
  0x3d   :  { %1134 = vmatpush3.bf16.msra.mxu1 %v1241_v57 }
  0x3e   :  { %1135 = vmatprep.subr.bf16.mxu1 %v1273_v38 }
  0x3f   :  { %1087 = vmatpush3.bf16.msra.mxu0 %v1243_v60 }
  0x40   :  { %1141 = vmatprep.subr.bf16.mxu0 %v1273_v38 }
  0x41   :  { %1136 = vmatpush3.bf16.msra.mxu1 %v1247_v61 }
  0x42   :  { %1161 = vmatprep.subr.bf16.mxu1 %v1273_v38  ;;  %641 = vmatmul.mubr.bf16.vlgmr.msra.gmra.mrb[4].mxu0 %v1244_v62 }
  0x43   :  { %1157 = vmatprep.mubr.msk.bf16.mxu0 %vm1274_vm0, %v1273_v38  ;;  %1142 = vmatpush3.bf16.msra.mxu0 %v1249_v0 }
  0x44   :  { %1138 = vmatmul.mubr.bf16.vlgmr.msra.gmra.mrb[4].mxu1 %v1248_v63  ;;  %1143 = vmatprep.subr.bf16.mxu0 %v1273_v38 }
  0x45   :  { %1177 = vmatprep.mubr.msk.bf16.mxu1 %vm1274_vm0, %v1273_v38  ;;  %1162 = vmatpush3.bf16.msra.mxu1 %v1257_v8 }
  0x46   :  { %1163 = vmatprep.subr.bf16.mxu1 %v1273_v38 }
  0x47   :  { %1144 = vmatpush3.bf16.msra.mxu0 %v1250_v1 }
  0x48   :  { %1145 = vmatprep.subr.bf16.mxu0 %v1273_v38 }
  0x49   :  { %1164 = vmatpush3.bf16.msra.mxu1 %v1258_v9 }
  0x4a   :  { %1165 = vmatprep.subr.bf16.mxu1 %v1273_v38 }
  0x4b   :  { %1146 = vmatpush3.bf16.msra.mxu0 %v1251_v2 }
  0x4c   :  { %1147 = vmatprep.subr.bf16.mxu0 %v1273_v38 }
  0x4d   :  { %1166 = vmatpush3.bf16.msra.mxu1 %v1259_v10 }
  0x4e   :  { %1167 = vmatprep.subr.bf16.mxu1 %v1273_v38 }
  0x4f   :  { %1148 = vmatpush3.bf16.msra.mxu0 %v1252_v3 }
  0x50   :  { %1149 = vmatprep.subr.bf16.mxu0 %v1273_v38 }
  0x51   :  { %1168 = vmatpush3.bf16.msra.mxu1 %v1260_v11 }
  0x52   :  { %1169 = vmatprep.subr.bf16.mxu1 %v1273_v38 }
  0x53   :  { %1150 = vmatpush3.bf16.msra.mxu0 %v1253_v4 }
  0x54   :  { %1151 = vmatprep.subr.bf16.mxu0 %v1273_v38 }
  0x55   :  { %1170 = vmatpush3.bf16.msra.mxu1 %v1261_v12 }
  0x56   :  { %1171 = vmatprep.subr.bf16.mxu1 %v1273_v38 }
  0x57   :  { %1152 = vmatpush3.bf16.msra.mxu0 %v1254_v5 }
  0x58   :  { %1153 = vmatprep.subr.bf16.mxu0 %v1273_v38 }
  0x59   :  { %1172 = vmatpush3.bf16.msra.mxu1 %v1262_v13 }
  0x5a   :  { %1173 = vmatprep.subr.bf16.mxu1 %v1273_v38 }
  0x5b   :  { %1154 = vmatpush3.bf16.msra.mxu0 %v1255_v6 }
  0x5c   :  { %1155 = vmatprep.subr.bf16.mxu0 %v1273_v38 }
  0x5d   :  { %1174 = vmatpush3.bf16.msra.mxu1 %v1263_v49 }
  0x5e   :  { %1175 = vmatprep.subr.bf16.mxu1 %v1273_v38  ;;  %v1019_v38 = vld [vmem:[%s1603_s6] ss:$0 sm:$0xff] }
  0x5f   :  { %1156 = vmatpush3.bf16.msra.mxu0 %v1256_v7 }
  0x61   :  { %1176 = vmatpush3.bf16.msra.mxu1 %v1264_v50 }
  0xf5   :  { %v1044_v14 = vpop.f32.mrb[0].mxu0 }
  0xf6   :  { %v1045_v16 = vpop.f32.mrb[1].mxu0 }
  0xf7   :  { %v1046_v17 = vadd.f32 %v1045_v16, %v1044_v14  ;;  %v1047_v18 = vpop.f32.mrb[2].mxu0  ;;  %v1066_v19 = vpop.f32.mrb[0].mxu1 }
  0xf8   :  { %v1048_v20 = vpop.f32.mrb[3].mxu0  ;;  %v1067_v23 = vpop.f32.mrb[1].mxu1 }
  0xf9   :  { %v561_v21 = vadd.f32 %v1046_v17, %v946_v15  ;;  %v1049_v22 = vadd.f32 %v1048_v20, %v1047_v18  ;;  %v1068_v24 = vadd.f32 %v1067_v23, %v1066_v19  ;;  %v1069_v25 = vpop.f32.mrb[2].mxu1 }
  0xfa   :  { %v1070_v27 = vpop.f32.mrb[3].mxu1 }
  0xfb   :  { %v564_v26 = vadd.f32 %v1049_v22, %v946_v15  ;;  %v602_v28 = vadd.f32 %v1068_v24, %v561_v21  ;;  %v1071_v29 = vadd.f32 %v1070_v27, %v1069_v25 }
  0xfd   :  { %v605_v30 = vadd.f32 %v1071_v29, %v564_v26 }
 0x115   :  { %v1088_v31 = vpop.f32.mrb[4].mxu0 }
 0x116   :  { %v1089_v32 = vpop.f32.mrb[5].mxu0 }
 0x117   :  { %v683_v33 = vpop.f32.mrb[4].mxu1  ;;  %v1090_v34 = vadd.f32 %v1089_v32, %v1088_v31  ;;  %v1091_v35 = vpop.f32.mrb[6].mxu0 }
 0x118   :  { %v1139_v36 = vpop.f32.mrb[5].mxu1  ;;  %v1092_v37 = vpop.f32.mrb[7].mxu0 }
 0x119   :  { %v686_v39 = vpop.f32.mrb[6].mxu1  ;;  %v643_v40 = vadd.f32 %v1090_v34, %v602_v28  ;;  %v1093_v41 = vadd.f32 %v1092_v37, %v1091_v35 }
 0x11a   :  { %v1140_v42 = vpop.f32.mrb[7].mxu1 }
 0x11b   :  { %v684_v43 = vadd.f32 %v683_v33, %v643_v40  ;;  %v646_v44 = vadd.f32 %v1093_v41, %v605_v30 }
 0x11d   :  { %v687_v45 = vadd.f32 %v686_v39, %v646_v44  ;;  %v690_v46 = vmax.f32 %v684_v43, 0.0 }
 0x11f   :  { %v691_v47 = vmax.f32 %v687_v45, 0.0 }
 0x121   :  { %v692_v48 = vpack.c.bf16 %v691_v47, %v690_v46 }
 0x123   :  { %1158 = vmatmul.mubr.bf16.vlgmr.msra.gmra.mrb[8].mxu0 %v692_v48 }
 0x1f6   :  { %v798_v52 = vpop.f32.mrb[8].mxu0 }
 0x1f7   :  { %v799_v53 = vadd.f32 %v1010_v51, %v798_v52  ;;  %v1159_v54 = vpop.f32.mrb[9].mxu0 }
 0x1f8   :  { %v801_v55 = vpop.f32.mrb[10].mxu0 }
 0x1f9   :  { %v802_v56 = vadd.f32 %v1010_v51, %v801_v55  ;;  %v1160_v57 = vpop.f32.mrb[11].mxu0  ;;  %v805_v58 = vmax.f32 %v799_v53, 0.0 }
 0x1fb   :  { %v806_v59 = vmax.f32 %v802_v56, 0.0 }
 0x1fd   :  { %v807_v60 = vpack.c.bf16 %v806_v59, %v805_v58 }
 0x1ff   :  { %1178 = vmatmul.mubr.bf16.vlgmr.msra.gmra.mrb[8].mxu1 %v807_v60 }
 0x2d2   :  { %v913_v61 = vpop.f32.mrb[8].mxu1 }
 0x2d3   :  { %v914_v62 = vadd.f32 %v1019_v38, %v913_v61  ;;  %v1179_v63 = vpop.f32.mrb[9].mxu1 }
 0x2d4   :  { %v916_v0 = vpop.f32.mrb[10].mxu1 }
 0x2d5   :  { %920 = vmax.xlane.f32.xlu0 %v914_v62  ;;  %v1180_v1 = vpop.f32.mrb[11].mxu1  ;;  %v917_v2 = vadd.f32 %v1019_v38, %v916_v0 }
 0x2d9   :  { %922 = vmax.xlane.f32.xlu0 %v917_v2 }
 0x362   :  { %v921_v3 = vpop.xlane.xlu0 %920 }
 0x363   :  { %v924_v4 = vsub.f32 %v914_v62, %v921_v3 }
 0x365   :  { %v926_v5 = vmul.f32 1.442695, %v924_v4 }
 0x366   :  { %v923_v6 = vpop.xlane.xlu0 %922 }
 0x367   :  { %v925_v7 = vsub.f32 %v917_v2, %v923_v6  ;;  %1265 = vpow2.f32 %v926_v5 }
 0x369   :  { %v928_v8 = vmul.f32 1.442695, %v925_v7 }
 0x36b   :  { %1267 = vpow2.f32 %v928_v8 }
 0x371   :  { %v1266_v9 = vpop.eup %1265 }
 0x372   :  { %930 = vadd.xlane.f32.xlu1 %v1266_v9 }
 0x375   :  { %v1268_v10 = vpop.eup %1267 }
 0x376   :  { %932 = vadd.xlane.f32.xlu1 %v1268_v10 }
 0x3ff   :  { %v931_v11 = vpop.xlane.xlu1 %930 }
 0x400   :  { %1269 = vlog2.f32 %v931_v11 }
 0x403   :  { %v933_v12 = vpop.xlane.xlu1 %932 }
 0x404   :  { %1271 = vlog2.f32 %v933_v12 }
 0x40a   :  { %v1270_v13 = vpop.eup %1269 }
 0x40b   :  { %v935_v14 = vmul.f32 0.6931472, %v1270_v13 }
 0x40d   :  { %v938_v15 = vsub.f32 %v924_v4, %v935_v14 }
 0x40e   :  { %v1272_v16 = vpop.eup %1271 }
 0x40f   :  { %940 = vst [vmem:[%s1604_s7] sm:$0xff] %v938_v15  ;;  %v937_v17 = vmul.f32 0.6931472, %v1272_v16 }
 0x411   :  { %v939_v18 = vsub.f32 %v925_v7, %v937_v17 }
 0x413   :  { %941 = vst [vmem:[%s1604_s7 + $0x8] sm:$0xff] %v939_v18 }

</bundles_post_ra>
